<compile_context>
chip_gen: v6e
topology: v6e:2x2x1
jax: 0.10.0
libtpu: 0.0.40
codegen_flags: <defaults>
</compile_context>

<pallas_src>
import functools

import jax
import jax.numpy as jnp
from jax.experimental import pallas as pl
from jax.experimental.pallas import tpu as pltpu

_LANE = 128
_SUBLANE = 8


def _round_up(n: int, m: int) -> int:
    return ((n + m - 1) // m) * m


def _mn_kernel(x_ref, w_ref, b_ref, o_ref):
    # x_ref: (tile_n, d_x), w_ref: (d_x, d_y_pad), b_ref: (1, d_y_pad)
    # o_ref: (tile_n, d_y_pad)  -- lane-dense (d_y_pad % 128 == 0)
    acc = jnp.dot(x_ref[...], w_ref[...], preferred_element_type=jnp.float32)
    o_ref[...] = (acc + b_ref[...].astype(jnp.float32)).astype(o_ref.dtype)


def prepare_mn_params(w_mn, b_mn, compute_dtype=None):
    """One-time parameter prep (hoisted out of the per-call hot path).

    Transposes PyTorch nn.Linear layout (d_y, d_x) -> (d_x, d_y) and zero-pads
    the output dimension up to a multiple of 128 so kernel stores are
    lane-dense full vregs.
    """
    d_y, d_x = w_mn.shape
    d_y_pad = _round_up(d_y, _LANE)
    w_dtype = compute_dtype if compute_dtype is not None else w_mn.dtype
    w_t = jnp.zeros((d_x, d_y_pad), dtype=w_dtype).at[:, :d_y].set(
        w_mn.T.astype(w_dtype))
    b2 = jnp.zeros((1, d_y_pad), dtype=jnp.float32).at[0, :d_y].set(
        b_mn.astype(jnp.float32))
    return w_t, b2, d_y


def _pick_tile_n(n_smps, d_x, d_y_pad, itemsize, vmem_budget=24 << 20):
    """Row tile sized so double-buffered x & o tiles (+ resident W, b) stay
    comfortably under the scoped-VMEM default on all generations (incl. v7x)."""
    per_row = 2 * 2 * (d_x + d_y_pad) * itemsize  # 2 streams x 2 buffers
    t = max(_SUBLANE, min(1024, vmem_budget // max(per_row, 1)))
    t = (t // _SUBLANE) * _SUBLANE
    t = min(t, _round_up(n_smps, _SUBLANE))
    return max(t, _SUBLANE)


def cond_gaussian_forward(x, w_t_padded, b2_padded, d_y, *, tile_n=None,
                          compute_dtype=None):
    """Pallas implementation of CondGaussianDistribution.forward (== mn_f(x)).

    Args:
      x:           (n_smps, d_x) float32
      w_t_padded:  (d_x, d_y_pad) weights from prepare_mn_params
      b2_padded:   (1, d_y_pad)  float32 bias from prepare_mn_params
      d_y:         true output width (columns beyond d_y are zero padding)
      compute_dtype: optional (e.g. jnp.bfloat16) to feed the MXU with bf16;
                     accumulation and bias add remain f32.
    Returns:
      mn: (n_smps, d_y) float32
    """
    n_smps, d_x = x.shape
    d_y_pad = w_t_padded.shape[1]
    out_dtype = jnp.float32

    if compute_dtype is not None:
        x = x.astype(compute_dtype)

    if tile_n is None:
        tile_n = _pick_tile_n(n_smps, d_x, d_y_pad, jnp.dtype(x.dtype).itemsize)

    # Handle a remainder tile by row-padding x (sliced off the result below).
    n_pad = _round_up(n_smps, tile_n)
    if n_pad != n_smps:
        x = jnp.zeros((n_pad, d_x), dtype=x.dtype).at[:n_smps].set(x)

    grid = (n_pad // tile_n,)

    flops = 2 * n_pad * d_x * d_y_pad + n_pad * d_y_pad
    bytes_accessed = (
        n_pad * d_x * jnp.dtype(x.dtype).itemsize
        + d_x * d_y_pad * jnp.dtype(w_t_padded.dtype).itemsize
        + d_y_pad * 4
        + n_pad * d_y_pad * 4
    )

    out = pl.pallas_call(
        _mn_kernel,
        out_shape=jax.ShapeDtypeStruct((n_pad, d_y_pad), out_dtype),
        grid_spec=pl.GridSpec(
            grid=grid,
            in_specs=[
                pl.BlockSpec((tile_n, d_x), lambda i: (i, 0)),
                # Constant block index => weight/bias DMA hoisted out of the
                # grid loop (resident in VMEM across iterations).
                pl.BlockSpec((d_x, d_y_pad), lambda i: (0, 0)),
                pl.BlockSpec((1, d_y_pad), lambda i: (0, 0)),
            ],
            out_specs=pl.BlockSpec((tile_n, d_y_pad), lambda i: (i, 0)),
        ),
        compiler_params=pltpu.CompilerParams(
            dimension_semantics=("parallel",)),
        cost_estimate=pl.CostEstimate(
            flops=flops, transcendentals=0, bytes_accessed=bytes_accessed),
    )(x, w_t_padded, b2_padded)

    return out[:n_smps, :d_y]


if __name__ == "__main__":
    # Small shapes consistent with the module: n_smps x d_x -> n_smps x d_y
    n_smps, d_x, d_y = 8, 32, 16

    key = jax.random.PRNGKey(0)
    k_x, k_wm, k_bm, k_ws, k_bs, k_x2 = jax.random.split(key, 6)

    x = jax.random.normal(k_x, (n_smps, d_x), dtype=jnp.float32)

    # Parameters (shapes match nn.Linear(d_x, d_y) in PyTorch layout).
    w_mn = jax.random.normal(k_wm, (d_y, d_x), dtype=jnp.float32) * 0.1
    b_mn = jax.random.normal(k_bm, (d_y,), dtype=jnp.float32) * 0.1
    # std_f params exist in the module but are not used by forward().
    w_sd = jax.random.normal(k_ws, (d_y, d_x), dtype=jnp.float32) * 0.1  # noqa: F841
    b_sd = jax.random.normal(k_bs, (d_y,), dtype=jnp.float32) * 0.1      # noqa: F841
    # TODO(synk): sample()/log_prob()/kl() use std_f and RNG; only forward() is kernelized here.

    # One-time parameter prep (not in the per-call hot path).
    w_t, b2, d_y_true = prepare_mn_params(w_mn, b_mn)

    # Run 1: exact small shapes.
    mn = cond_gaussian_forward(x, w_t, b2, d_y_true)
    mn = jax.block_until_ready(mn)
    mn_ref = x @ w_mn.T + b_mn
    assert mn.shape == (n_smps, d_y)
    assert jnp.allclose(mn, mn_ref, atol=1e-5, rtol=1e-5)

    # Run 2: non-tile-divisible sample count exercises the remainder path.
    n2 = 100
    x2 = jax.random.normal(k_x2, (n2, d_x), dtype=jnp.float32)
    mn2 = cond_gaussian_forward(x2, w_t, b2, d_y_true)
    mn2 = jax.block_until_ready(mn2)
    mn2_ref = x2 @ w_mn.T + b_mn
    assert mn2.shape == (n2, d_y)
    assert jnp.allclose(mn2, mn2_ref, atol=1e-5, rtol=1e-5)

    print("KERNEL_OK")
</pallas_src>

<mosaic_0001>
module attributes {stable_mosaic.version = 11 : i64} {
  func.func @_mn_kernel(%arg0: i32, %arg1: memref<8x32xf32, #tpu.memory_space<vmem>>, %arg2: memref<32x128xf32, #tpu.memory_space<vmem>>, %arg3: memref<1x128xf32, #tpu.memory_space<vmem>>, %arg4: memref<8x128xf32, #tpu.memory_space<vmem>>) attributes {dimension_semantics = [#tpu.dimension_semantics<parallel>], iteration_bounds = array<i64: 1>, scalar_prefetch = 0 : i64, scratch_operands = 0 : i64, tpu.core_type = #tpu.core_type<tc>, window_params = [{transform_indices = @transform_0, window_bounds = array<i64: 8, 32>}, {pipeline_mode = #tpu.pipeline_mode<synchronous>, transform_indices = @transform_1, window_bounds = array<i64: 32, 128>}, {pipeline_mode = #tpu.pipeline_mode<synchronous>, transform_indices = @transform_2, window_bounds = array<i64: 1, 128>}, {transform_indices = @transform_3, window_bounds = array<i64: 8, 128>}]} {
    %c0 = arith.constant 0 : index
    %c0_0 = arith.constant 0 : index
    %0 = vector.load %arg1[%c0, %c0_0] : memref<8x32xf32, #tpu.memory_space<vmem>>, vector<8x32xf32>
    %c0_1 = arith.constant 0 : index
    %c0_2 = arith.constant 0 : index
    %1 = vector.load %arg2[%c0_1, %c0_2] : memref<32x128xf32, #tpu.memory_space<vmem>>, vector<32x128xf32>
    %cst = arith.constant dense<0.000000e+00> : vector<8x128xf32>
    %2 = tpu.matmul %0, %1, %cst {dimension_numbers = #tpu.dot_dimension_numbers<[1], [0], [0], [1], [0, 0, 1, 1], [], []>} : vector<8x32xf32>, vector<32x128xf32>, vector<8x128xf32> -> vector<8x128xf32>
    %c0_3 = arith.constant 0 : index
    %c0_4 = arith.constant 0 : index
    %3 = vector.load %arg3[%c0_3, %c0_4] : memref<1x128xf32, #tpu.memory_space<vmem>>, vector<1x128xf32>
    %4 = vector.broadcast %3 : vector<1x128xf32> to vector<8x128xf32>
    %5 = arith.addf %2, %4 : vector<8x128xf32>
    %c0_5 = arith.constant 0 : index
    %c0_6 = arith.constant 0 : index
    %6 = vector.load %arg4[%c0_5, %c0_6] : memref<8x128xf32, #tpu.memory_space<vmem>>, vector<8x128xf32>
    tpu.vector_store %arg4[%c0_5, %c0_6], %5 {strides = array<i32>} : memref<8x128xf32, #tpu.memory_space<vmem>>, vector<8x128xf32>,
    return
  }
  func.func @transform_0(%arg0: i32) -> (i32, i32) {
    %c0_i32 = arith.constant 0 : i32
    %c0_i32_0 = arith.constant 0 : i32
    return %arg0, %c0_i32 : i32, i32
  }
  func.func @transform_1(%arg0: i32) -> (i32, i32) {
    %c0_i32 = arith.constant 0 : i32
    %c0_i32_0 = arith.constant 0 : i32
    %c0_i32_1 = arith.constant 0 : i32
    return %c0_i32, %c0_i32_0 : i32, i32
  }
  func.func @transform_2(%arg0: i32) -> (i32, i32) {
    %c0_i32 = arith.constant 0 : i32
    %c0_i32_0 = arith.constant 0 : i32
    %c0_i32_1 = arith.constant 0 : i32
    return %c0_i32, %c0_i32_0 : i32, i32
  }
  func.func @transform_3(%arg0: i32) -> (i32, i32) {
    %c0_i32 = arith.constant 0 : i32
    %c0_i32_0 = arith.constant 0 : i32
    return %arg0, %c0_i32 : i32, i32
  }
}

</mosaic_0001>

<bundles_post_ra>
// kernel: tpu_custom_call.1
= control target key start
LH: loop header
LB: loop body
LE: loop exit
PB: predicated region body
PF: predicated region fallthrough
CT: control target
= control target key end

     0   :  { %8 = vsyncpa [#allocation3], 0  ;;  %s274_s0 = inlined_call_operand.hbm [shape: f32[8,32], index: 0, kind: input, shape index: {}]   ;;  %s275_s1 = inlined_call_operand.hbm [shape: f32[32,128], index: 1, kind: input, shape index: {}]   ;;  %s276_s2 = inlined_call_operand.vmem [shape: f32[1,128], index: 2, kind: input, shape index: {}]   ;;  %s277_s3 = inlined_call_operand.hbm [shape: f32[8,128], index: 3, kind: output, shape index: {}]  }
   0x1   :  { %9 = vsyncpa [#allocation6], 0 }
   0x2   :  { %10 = vsyncpa [#allocation4], 0  ;;  %s235_s12 = smov [#allocation2]   ;;  %s236_s14 = smov [#allocation5]  }
   0x3   :  { %s17_s13 = sshll.u32 %s235_s12, 4  ;;  %s26_s15 = sshll.u32 %s236_s14, 4  ;;  %s18_s13 = int_to_ptr.vmem [resolvable:$true] %s17_s13  ;;  %s27_s15 = int_to_ptr.vmem [resolvable:$true] %s26_s15 }
   0x4   :  { %s177_s16 = scalar_lea.vmem %s18_s13, 128  ;;  %p182_p1 = scmp.lt.s32.totalorder %s18_s13, %s18_s13 }
   0x5   :  { %p178_p0 = scmp.ne.s32.totalorder %s18_s13, %s177_s16  ;;  %p183_p2 = scmp.lt.s32.totalorder %s177_s16, %s177_s16 }
   0x7   :  { %p184_p3 = por %p183_p2, %p182_p1 }
   0x9   :  { %p185_p4 = pnand %p184_p3, %p178_p0 }
   0xb   :  { %188 = shalt.err (!%p185_p4)
}
   0xc   :  { %20 = dma.hbm_to_vmem [thread:$0]  %s274_s0, 128, %s18_s13, [#allocation3]  }
   0xd   :  { %s197_s19 = scalar_lea.vmem %s27_s15, 512  ;;  %p202_p6 = scmp.lt.s32.totalorder %s27_s15, %s27_s15 }
   0xe   :  { %p198_p5 = scmp.ne.s32.totalorder %s27_s15, %s197_s19  ;;  %p203_p7 = scmp.lt.s32.totalorder %s197_s19, %s197_s19 }
  0x10   :  { %p204_p8 = por %p203_p7, %p202_p6 }
  0x12   :  { %p205_p9 = pnand %p204_p8, %p198_p5 }
  0x14   :  { %208 = shalt.err (!%p205_p9)
}
  0x15   :  { %s237_s20 = smov 128   ;;  %s238_s21 = smov 8  }
  0x16   :  { %32 = dma.hbm_to_vmem [thread:$0]  %s275_s1, 512, %s27_s15, [#allocation6], %s237_s20, %s237_s20, %s238_s21  }
  0x17   :  { %229 = dma.done.wait [#allocation3], 128  }
  0x18   :  { %230 = vsyncadd [#allocation3], 4294967168 }
  0x19   :  { %231 = dma.done.wait [#allocation6], 512  }
  0x1a   :  { %232 = vsyncadd [#allocation6], 4294966784  ;;  %v239_v0 = vmov 0.0   ;;  %vm240_vm0 = vmmov 0   ;;  %v45_v1 = vld [vmem:[#allocation5 + $0x18] sm:$0xff]  ;;  %v44_v2 = vld [vmem:[#allocation5 + $0x10] sm:$0xff] }
  0x1b   :  { %151 = vmatprep.subr.mxu0 %v239_v0  ;;  %159 = vmatprep.mubr.msk.f32.mxu0 %vm240_vm0, %v239_v0  ;;  %v43_v3 = vld [vmem:[#allocation5 + $0x8] sm:$0xff]  ;;  %v42_v4 = vld [vmem:[#allocation5] sm:$0xff]  ;;  %v41_v5 = vld [vmem:[#allocation2] sm:$0xff]  ;;  %vm53_vm1 = vcmask 261120   ;;  %s241_s24 = smov [#allocation7]  }
  0x1c   :  { %152 = vmatpush3.msra.mxu0 %v45_v1  ;;  %v144_v6 = vld [vmem:[%s276_s2] ss:$0 sm:$0xff]  ;;  %s134_s25 = sshll.u32 %s241_s24, 4  ;;  %s135_s25 = int_to_ptr.vmem [resolvable:$true] %s134_s25 }
  0x1d   :  { %153 = vmatprep.subr.mxu0 %v239_v0  ;;  %s209_s26 = scalar_lea.vmem %s135_s25, 128  ;;  %p214_p11 = scmp.lt.s32.totalorder %s135_s25, %s135_s25 }
  0x1e   :  { %154 = vmatpush3.msra.mxu0 %v44_v2  ;;  %p210_p10 = scmp.ne.s32.totalorder %s135_s25, %s209_s26  ;;  %p215_p12 = scmp.lt.s32.totalorder %s209_s26, %s209_s26 }
  0x1f   :  { %155 = vmatprep.subr.mxu0 %v239_v0 }
  0x20   :  { %156 = vmatpush3.msra.mxu0 %v43_v3  ;;  %p216_p13 = por %p215_p12, %p214_p11 }
  0x21   :  { %157 = vmatprep.subr.mxu0 %v239_v0 }
  0x22   :  { %158 = vmatpush3.msra.mxu0 %v42_v4  ;;  %p217_p0 = pnand %p216_p13, %p210_p10 }
  0x23   :  { %160 = vmatmul.mubr.msk.f32.vlgmr.msra.gmra.mxu0 %vm53_vm1, %v41_v5 }
  0xe3   :  { %v123_v7 = vpop.f32.mrf.mxu0 }
  0xe4   :  { %v124_v8 = vadd.f32 %v144_v6, %v123_v7 }
  0xe5   :  { %v161_v9 = vpop.f32.mrf.mxu0 }
  0xe6   :  { %127 = vst [vmem:[#allocation7] sm:$0xff] %v124_v8 }
  0xe7   :  { %220 = shalt.err (!%p217_p0)
}
  0xe8   :  { %137 = dma.vmem_to_hbm [thread:$0]  %s135_s25, 128, %s277_s3, [#allocation4]  }
  0xe9   :  { %233 = dma.done.wait [#allocation4], 128  }
  0xea   :  { %234 = vsyncadd [#allocation4], 4294967168 }
  0xeb   :  { %141 = vsyncpa [#allocation3], 1 }
  0xec   :  { %142 = vsyncpa [#allocation6], 1 }
  0xed   :  { %143 = vsyncpa [#allocation4], 1 }

</bundles_post_ra>
